<compile_context>
chip_gen: v5e
topology: v5e:2x2
jax: 0.10.0
libtpu: 0.0.40
codegen_flags: <defaults>
</compile_context>

<pallas_src>
import math

import jax
import jax.numpy as jnp
from jax.experimental import pallas as pl
from jax.experimental.pallas import tpu as pltpu


_LANE = 128
_DEFAULT_TILE_BYTES = 4 * 1024 * 1024   # v5e/v6e: already at the HBM roofline plateau
_V7X_TILE_BYTES = 6 * 1024 * 1024       # v7x: 3.2 TB/s -> larger tiles amortize step overhead
_VMEM_HARD_CAP = 48 * 1024 * 1024       # stays well under v7x's 64 MiB/TC physical VMEM


# ----------------------------- kernel -------------------------------------- #

def _actnorm_kernel(x_ref, scale_ref, bias_ref, o_ref):
    # x_ref/o_ref: (blk_r, blk_n) lane-dense tile.
    # scale_ref/bias_ref: either (blk_r, 1) per-row columns or (1, blk_n)
    # per-lane rows -- the VPU broadcast handles both orientations.
    o_ref[...] = x_ref[...] * scale_ref[...] + bias_ref[...]


# ----------------------------- helpers ------------------------------------- #

def _max_tile_bytes():
    """Per-x-tile byte budget, gated on the chip (bigger on v7x)."""
    try:
        vmem = pltpu.get_tpu_info().vmem_capacity_bytes
        if vmem <= 64 * 1024 * 1024:     # v7x exposes 64 MiB/TC (v5e/v6e: 128 MiB)
            return _V7X_TILE_BYTES
    except Exception:
        pass
    return _DEFAULT_TILE_BYTES


def _vmem_limit_bytes(tile_bytes, param_blk_bytes):
    """Scoped-VMEM request ~= double-buffered in+out tiles + params + slack."""
    usage = 4 * tile_bytes + 4 * param_blk_bytes + (4 << 20)
    return int(min(max(usage, 16 << 20), _VMEM_HARD_CAP))


def _sublane_multiple(itemsize):
    # Sub-32-bit dtypes pack along sublanes: 8 rows f32, 16 bf16/f16, 32 int8/fp8.
    return max(8, 32 // itemsize)


def _pick_blocks(R, N, itemsize, max_tile_bytes):
    """Pick a (blk_r, blk_n) tile of ~max_tile_bytes respecting (sublane, 128) rules."""
    sub = _sublane_multiple(itemsize)
    row_bytes = N * itemsize
    if sub * row_bytes <= max_tile_bytes:
        # Full lane-dense rows fit; stack as many rows as the budget allows.
        blk_n = N
        rows = max_tile_bytes // row_bytes
        blk_r = R if rows >= R else max(sub, (rows // sub) * sub)
    else:
        # Even one sublane group of full rows overflows the budget: chunk lanes.
        blk_r = R if R <= sub else sub
        blk_n = (max_tile_bytes // (blk_r * itemsize)) // _LANE * _LANE
        blk_n = max(_LANE, min(blk_n, N))
    return blk_r, blk_n


def _fold_params(loc, scale, dtype, C):
    scale_f = scale.reshape(C).astype(jnp.float32)
    loc_f = loc.reshape(C).astype(jnp.float32)
    bias_f = scale_f * loc_f                 # scale*(x+loc) == x*scale + scale*loc
    return scale_f.astype(dtype), bias_f.astype(dtype)


# ----------------------------- pallas runner -------------------------------- #

def _run_actnorm(x2, scale2, bias2, params_per_row, donate):
    R, N = x2.shape
    itemsize = x2.dtype.itemsize
    blk_r, blk_n = _pick_blocks(R, N, itemsize, _max_tile_bytes())
    grid = (pl.cdiv(R, blk_r), pl.cdiv(N, blk_n))

    if params_per_row:
        p_blk = (blk_r, 1)
        p_map = lambda r, n: (r, 0)
        p_blk_bytes = blk_r * scale2.dtype.itemsize
    else:
        p_blk = (1, blk_n)
        p_map = lambda r, n: (0, n)
        p_blk_bytes = blk_n * scale2.dtype.itemsize

    tile_bytes = blk_r * blk_n * itemsize
    kwargs = {}
    if donate:
        # Output aliases x2 (identical in/out index maps): avoids allocating a
        # second full-size HBM buffer when the caller can donate the input.
        kwargs["input_output_aliases"] = {0: 0}

    return pl.pallas_call(
        _actnorm_kernel,
        out_shape=jax.ShapeDtypeStruct((R, N), x2.dtype),
        grid_spec=pltpu.PrefetchScalarGridSpec(
            num_scalar_prefetch=0,
            grid=grid,
            in_specs=[
                pl.BlockSpec((blk_r, blk_n), lambda r, n: (r, n)),
                pl.BlockSpec(p_blk, p_map),
                pl.BlockSpec(p_blk, p_map),
            ],
            out_specs=pl.BlockSpec((blk_r, blk_n), lambda r, n: (r, n)),
        ),
        compiler_params=pltpu.CompilerParams(
            dimension_semantics=("parallel", "parallel"),
            vmem_limit_bytes=_vmem_limit_bytes(tile_bytes, p_blk_bytes)),
        **kwargs,
    )(x2, scale2, bias2)


# ----------------------------- public wrapper ------------------------------- #

def actnorm_forward(x, loc, scale, logdet=False, donate_input=False):
    """ActNorm forward. x: (B, C, H, W) or (B, C); loc/scale: (1, C, 1, 1)."""
    orig_shape = x.shape
    if x.ndim == 2:
        B, C = x.shape
        H = W = 1                               # PyTorch unsqueezes to H = W = 1
    else:
        B, C, H, W = x.shape
    HW = H * W
    scale_c, bias_c = _fold_params(loc, scale, x.dtype, C)

    if HW % _LANE == 0:
        # Lane-dense spatial extent: fold batch+channel into rows, HW on lanes.
        x2 = x.reshape(B * C, HW)                           # free reshape (NCHW contiguous)
        scale2 = jnp.tile(scale_c, B).reshape(B * C, 1)     # B*C scalars, negligible
        bias2 = jnp.tile(bias_c, B).reshape(B * C, 1)
        params_per_row = True
    else:
        # Small / odd spatial extent (incl. HW == 1): fold C*HW into lanes and
        # expand per-channel params to per-lane rows (tiny vs. x traffic).
        N = C * HW
        x2 = x.reshape(B, N)
        scale2 = jnp.repeat(scale_c, HW).reshape(1, N)
        bias2 = jnp.repeat(bias_c, HW).reshape(1, N)
        if N % _LANE != 0:
            # Pack k rows together so the lane extent becomes a multiple of 128
            # (unmasked full-lane stores) whenever B allows it.
            k = _LANE // math.gcd(N, _LANE)
            if k > 1 and B % k == 0:
                x2 = x2.reshape(B // k, k * N)
                scale2 = jnp.tile(scale2, (1, k))
                bias2 = jnp.tile(bias2, (1, k))
        params_per_row = False

    h2 = _run_actnorm(x2, scale2, bias2, params_per_row, donate_input)
    h = h2.reshape(orig_shape)

    if not logdet:
        return h

    # C-length reduction: plain jnp, kept in float32 (a pallas_call here is overhead).
    log_abs_sum = jnp.sum(jnp.log(jnp.abs(scale.astype(jnp.float32))))
    ld = (H * W) * log_abs_sum * jnp.ones((B,), dtype=jnp.float32)
    return h, ld


# ----------------------------- test ----------------------------------------- #

if __name__ == "__main__":
    key = jax.random.PRNGKey(0)
    k_x, k_loc, k_scale = jax.random.split(key, 3)

    # --- 4-D, lane-dense spatial path (HW = 256 -> rows = B*C) --------------
    B, C, H, W = 2, 4, 16, 16
    x = jax.random.normal(k_x, (B, C, H, W), dtype=jnp.float32)
    loc = jax.random.normal(k_loc, (1, C, 1, 1), dtype=jnp.float32)
    scale = 0.5 + jax.random.uniform(k_scale, (1, C, 1, 1), dtype=jnp.float32)

    h, ld = actnorm_forward(x, loc, scale, logdet=True)
    h = jax.block_until_ready(h)
    ld = jax.block_until_ready(ld)
    h_ref = scale * (x + loc)
    ld_ref = H * W * jnp.sum(jnp.log(jnp.abs(scale))) * jnp.ones((B,), jnp.float32)
    assert jnp.allclose(h, h_ref, atol=1e-5, rtol=1e-5), "4D lane-dense mismatch"
    assert jnp.allclose(ld, ld_ref, atol=1e-4, rtol=1e-5), "logdet mismatch"

    # --- 4-D, small/odd spatial path with row packing (HW=16, C*HW=64 -> 128)
    B2, C2, H2, W2 = 8, 4, 4, 4
    x_s = jax.random.normal(k_x, (B2, C2, H2, W2), dtype=jnp.float32)
    loc_s = jax.random.normal(k_loc, (1, C2, 1, 1), dtype=jnp.float32)
    scale_s = 0.5 + jax.random.uniform(k_scale, (1, C2, 1, 1), dtype=jnp.float32)
    h_s = jax.block_until_ready(actnorm_forward(x_s, loc_s, scale_s))
    assert jnp.allclose(h_s, scale_s * (x_s + loc_s), atol=1e-5, rtol=1e-5), \
        "4D packed-rows mismatch"

    # --- 2-D (squeeze) path --------------------------------------------------
    x2d = jax.random.normal(k_x, (B, C), dtype=jnp.float32)
    h2d, ld2d = actnorm_forward(x2d, loc, scale, logdet=True)
    h2d = jax.block_until_ready(h2d)
    ld2d = jax.block_until_ready(ld2d)
    h2d_ref = (scale * (x2d[:, :, None, None] + loc))[:, :, 0, 0]
    ld2d_ref = jnp.sum(jnp.log(jnp.abs(scale))) * jnp.ones((B,), jnp.float32)
    assert jnp.allclose(h2d, h2d_ref, atol=1e-5, rtol=1e-5), "2D forward mismatch"
    assert jnp.allclose(ld2d, ld2d_ref, atol=1e-4, rtol=1e-5), "2D logdet mismatch"

    # --- bf16, dtype-aware sublane rounding (loose tolerance: folded bias
    #     in bf16 differs from scale*(x+loc) by ~1 ulp) -----------------------
    x_bf = x.astype(jnp.bfloat16)
    h_bf = jax.block_until_ready(actnorm_forward(x_bf, loc, scale))
    h_bf_ref = scale * (x_bf.astype(jnp.float32) + loc)
    assert jnp.allclose(h_bf.astype(jnp.float32), h_bf_ref, atol=1e-1, rtol=5e-2), \
        "bf16 forward mismatch"

    # TODO(synk): data-dependent initialize() (training-time first-batch mean/std
    # buffer mutation) and the stateful `initialized` flag are module state, not
    # part of the inference forward hot path; intentionally not ported.
    print("KERNEL_OK")
</pallas_src>

<mosaic_0001>
module attributes {stable_mosaic.version = 11 : i64} {
  func.func @_actnorm_kernel(%arg0: i32, %arg1: i32, %arg2: memref<8x256xf32, #tpu.memory_space<vmem>>, %arg3: memref<8x1xf32, #tpu.memory_space<vmem>>, %arg4: memref<8x1xf32, #tpu.memory_space<vmem>>, %arg5: memref<8x256xf32, #tpu.memory_space<vmem>>) attributes {dimension_semantics = [#tpu.dimension_semantics<parallel>, #tpu.dimension_semantics<parallel>], iteration_bounds = array<i64: 1, 1>, scalar_prefetch = 0 : i64, scratch_operands = 0 : i64, tpu.core_type = #tpu.core_type<tc>, window_params = [{transform_indices = @transform_0, window_bounds = array<i64: 8, 256>}, {transform_indices = @transform_1, window_bounds = array<i64: 8, 1>}, {transform_indices = @transform_2, window_bounds = array<i64: 8, 1>}, {transform_indices = @transform_3, window_bounds = array<i64: 8, 256>}]} {
    %c0 = arith.constant 0 : index
    %c0_0 = arith.constant 0 : index
    %0 = vector.load %arg2[%c0, %c0_0] : memref<8x256xf32, #tpu.memory_space<vmem>>, vector<8x256xf32>
    %c0_1 = arith.constant 0 : index
    %c0_2 = arith.constant 0 : index
    %1 = vector.load %arg3[%c0_1, %c0_2] : memref<8x1xf32, #tpu.memory_space<vmem>>, vector<8x1xf32>
    %2 = vector.broadcast %1 : vector<8x1xf32> to vector<8x256xf32>
    %3 = arith.mulf %0, %2 : vector<8x256xf32>
    %c0_3 = arith.constant 0 : index
    %c0_4 = arith.constant 0 : index
    %4 = vector.load %arg4[%c0_3, %c0_4] : memref<8x1xf32, #tpu.memory_space<vmem>>, vector<8x1xf32>
    %5 = vector.broadcast %4 : vector<8x1xf32> to vector<8x256xf32>
    %6 = arith.addf %3, %5 : vector<8x256xf32>
    %c0_5 = arith.constant 0 : index
    %c0_6 = arith.constant 0 : index
    %7 = vector.load %arg5[%c0_5, %c0_6] : memref<8x256xf32, #tpu.memory_space<vmem>>, vector<8x256xf32>
    tpu.vector_store %arg5[%c0_5, %c0_6], %6 {strides = array<i32>} : memref<8x256xf32, #tpu.memory_space<vmem>>, vector<8x256xf32>,
    return
  }
  func.func @transform_0(%arg0: i32, %arg1: i32) -> (i32, i32) {
    %c0_i32 = arith.constant 0 : i32
    return %arg0, %arg1 : i32, i32
  }
  func.func @transform_1(%arg0: i32, %arg1: i32) -> (i32, i32) {
    %c0_i32 = arith.constant 0 : i32
    %c0_i32_0 = arith.constant 0 : i32
    return %arg0, %c0_i32 : i32, i32
  }
  func.func @transform_2(%arg0: i32, %arg1: i32) -> (i32, i32) {
    %c0_i32 = arith.constant 0 : i32
    %c0_i32_0 = arith.constant 0 : i32
    return %arg0, %c0_i32 : i32, i32
  }
  func.func @transform_3(%arg0: i32, %arg1: i32) -> (i32, i32) {
    %c0_i32 = arith.constant 0 : i32
    return %arg0, %arg1 : i32, i32
  }
}

</mosaic_0001>

<bundles_post_ra>
// kernel: tpu_custom_call.1
= control target key start
LH: loop header
LB: loop body
LE: loop exit
PB: predicated region body
PF: predicated region fallthrough
CT: control target
= control target key end

     0   :  { %s117_s0 = inlined_call_operand.vmem [shape: f32[8,256], index: 0, kind: input, shape index: {}]   ;;  %s118_s1 = inlined_call_operand.vmem [shape: f32[8,1], index: 1, kind: input, shape index: {}]   ;;  %s119_s2 = inlined_call_operand.vmem [shape: f32[8,1], index: 2, kind: input, shape index: {}]   ;;  %s120_s3 = inlined_call_operand.hbm [shape: f32[8,256], index: 3, kind: output, shape index: {}]  }
   0x1   :  { %v17_v0 = vld [vmem:[%s118_s1] sm:$0xff] }
   0x2   :  { %8 = vsyncpa [#allocation3], 0  ;;  %v80_v1 = vmov 0   ;;  %v25_v2 = vld [vmem:[%s119_s2] sm:$0xff]  ;;  %v16_v5 = vld [vmem:[%s117_s0 + $0x8] sm:$0xff]  ;;  %s81_s1 = smov [#allocation2]  }
   0x3   :  { %53 = vset.pattern.permute.xlu0 %v80_v1  ;;  %v15_v4 = vld [vmem:[%s117_s0] sm:$0xff]  ;;  %s40_s20 = sshll.u32 %s81_s1, 4  ;;  %s42_s23 = sshll.u32 %s120_s3, 4  ;;  %s41_s20 = int_to_ptr.vmem [resolvable:$true] %s40_s20  ;;  %s43_s23 = int_to_ptr.hbm [resolvable:$true] %s42_s23 }
   0x4   :  { %20 = vperm.xlu0 %53, %v17_v0  }
   0xc   :  { %28 = vperm.xlu0 %53, %v25_v2  }
  0x76   :  { %v21_v3 = vpop.permute.xlu0 %20 }
  0x77   :  { %v23_v6 = vmul.f32 %v21_v3, %v15_v4  ;;  %v24_v7 = vmul.f32 %v21_v3, %v16_v5 }
  0x7e   :  { %v29_v8 = vpop.permute.xlu0 %28 }
  0x7f   :  { %v31_v9 = vadd.f32 %v29_v8, %v23_v6  ;;  %v32_v10 = vadd.f32 %v29_v8, %v24_v7 }
  0x81   :  { %33 = vst [vmem:[#allocation2] sm:$0xff] %v31_v9 }
  0x82   :  { %34 = vst [vmem:[#allocation2 + $0x8] sm:$0xff] %v32_v10 }
  0x83   :  { %45 = dma.vmem_to_hbm [thread:$0]  %s41_s20, 256, %s43_s23, [#allocation3]  }
  0x84   :  { %78 = dma.done.wait [#allocation3], 256  }
  0x85   :  { %79 = vsyncadd [#allocation3], 4294967040 }
  0x86   :  { %50 = vsyncpa [#allocation3], 1 }

</bundles_post_ra>
